<compile_context>
chip_gen: v7x
topology: tpu7x:2x2x1
jax: 0.10.0
libtpu: 0.0.40
codegen_flags: <defaults>
</compile_context>

<pallas_src>
import math

import jax
import jax.numpy as jnp
from jax import lax
from jax.experimental import pallas as pl
from jax.experimental.pallas import tpu as pltpu


def _generator_rl_kernel(x_ref, a_ref, w_ref, out_ref):
    """One grid step = Bb batch elements, all windows and both modes resident.

    x_ref : (2, Bb, W, N, F_in)   mode-stacked node features
    a_ref : (2, Bb, W, N, N)      mode-stacked adjacencies
    w_ref : (W, F_in, F_out)      per-window GCN weights (grid-resident)
    out   : (Bb, W, 2N, F_out)    PyTorch output layout
    """
    f32 = jnp.float32
    _, Bb, W, N, F_in = x_ref.shape

    x = x_ref[...].astype(f32)
    a = a_ref[...].astype(f32)

    # adj_hat = adj + I via a VPU mask add (no eye matmul).
    row = lax.broadcasted_iota(jnp.int32, (N, N), 0)
    col = lax.broadcasted_iota(jnp.int32, (N, N), 1)
    diag = (row == col).astype(f32)                          # (N, N)
    a_hat = a + diag                                         # (2, Bb, W, N, N)

    # Symmetric normalization pushed through the propagation:
    #   (D A_hat D) @ x = d * (A_hat @ (d * x)),  d = rowsum(A_hat)^-0.5
    # rowsum >= 1 for non-negative adjacency + I (same domain as reference).
    d = lax.rsqrt(jnp.sum(a_hat, axis=-1, keepdims=True))    # (2, Bb, W, N, 1)
    dx = d * x

    # Node propagation.  N is tiny, so contract on the VPU as an unrolled
    # broadcast-multiply-add over the N neighbour terms; batched NxNxF f32
    # matmuls at this size would be almost pure MXU dispatch latency.
    if N <= 16:
        y = a_hat[..., :, 0:1] * dx[..., 0:1, :]
        for j in range(1, N):
            y = y + a_hat[..., :, j:j + 1] * dx[..., j:j + 1, :]
    else:
        y = jnp.einsum('mbwij,mbwjf->mbwif', a_hat, dx,
                       preferred_element_type=f32)
    y = d * y                                                # (2, Bb, W, N, F_in)

    # Per-window feature transform: fold rows over (mode, batch, node) into a
    # single (2*Bb*N, F_in) @ (F_in, F_out) MXU call per window (W dispatches
    # per step instead of 2*Bb*W tiny ones).  Modes are written with static,
    # sublane-aligned slice stores -- no axis=-2 concat / relayout.
    for wi in range(W):
        h = y[:, :, wi].reshape(2 * Bb * N, F_in)
        o = jnp.dot(h, w_ref[wi].astype(f32),
                    preferred_element_type=f32)              # (2*Bb*N, F_out)
        o = o.reshape(2, Bb, N, -1).astype(out_ref.dtype)
        out_ref[:, wi, :N, :] = o[0]                         # bike rows [0, N)
        out_ref[:, wi, N:, :] = o[1]                         # taxi rows [N, 2N)

    # TODO(synk): output stays 32-lane (F_out=32); a lane-dense (2N*F_out) slab
    # would need an in-kernel node->lane relayout that costs more than it saves
    # at ~12 KiB of output per batch element.


def generator_rl_forward(bike_in, bike_adj, taxi_in, taxi_adj, gcn_weights,
                         *, batch_block=None):
    B, W, N, F_in = bike_in.shape
    F_out = gcn_weights.shape[-1]

    # Hoist the mode stacking out of the kernel (free leading-axis stack in
    # XLA; removes two full-VMEM-copy concats per grid step).
    x_all = jnp.stack([bike_in, taxi_in], axis=0)            # (2, B, W, N, F_in)
    a_all = jnp.stack([bike_adj, taxi_adj], axis=0)          # (2, B, W, N, N)

    if batch_block is None:
        # Large batch blocks amortize the ~0.35us/step pipeline overhead.
        # Cap by lane-padded VMEM footprint (~72 KiB per batch element once
        # the 8/16/32-wide minors pad to 128 lanes, x2 for double buffering:
        # 64 elements ~ 9 MiB << 32 MiB scoped VMEM on every generation), and
        # keep >=2 grid steps when B allows so v7x's two TensorCores both get
        # a "parallel" slice of the grid.
        batch_block = min(64, max(1, B // 2))
        while B % batch_block:
            batch_block -= 1
    Bb = batch_block
    grid = (B // Bb,)

    out_shape = jax.ShapeDtypeStruct((B, W, 2 * N, F_out), bike_in.dtype)

    return pl.pallas_call(
        _generator_rl_kernel,
        out_shape=out_shape,
        grid_spec=pltpu.PrefetchScalarGridSpec(
            num_scalar_prefetch=0,
            grid=grid,
            in_specs=[
                pl.BlockSpec((2, Bb, W, N, F_in), lambda b: (0, b, 0, 0, 0)),
                pl.BlockSpec((2, Bb, W, N, N), lambda b: (0, b, 0, 0, 0)),
                # Constant block index across the grid -> weights loaded once,
                # stay resident (no redundant DMAs).
                pl.BlockSpec((W, F_in, F_out), lambda b: (0, 0, 0)),
            ],
            out_specs=pl.BlockSpec((Bb, W, 2 * N, F_out),
                                   lambda b: (b, 0, 0, 0)),
        ),
        compiler_params=pltpu.CompilerParams(
            dimension_semantics=("parallel",),
            vmem_limit_bytes=32 * 1024 * 1024),
    )(x_all, a_all, gcn_weights)


def _reference_forward(bike_in, bike_adj, taxi_in, taxi_adj, gcn_weights):
    """Plain-JAX replica of the PyTorch forward (full 2N x 2N block adjacency)."""
    B, W, N, _ = bike_in.shape
    eye = jnp.broadcast_to(jnp.eye(N, dtype=bike_in.dtype), (B, W, N, N))

    def normalize(adj):
        adj = adj + eye
        diag = jnp.power(jnp.sum(adj, axis=-1, keepdims=True), -0.5) * eye
        return diag @ adj @ diag

    bike_n = normalize(bike_adj)
    taxi_n = normalize(taxi_adj)

    zeros = jnp.zeros_like(bike_n)
    top = jnp.concatenate([bike_n, zeros], axis=-1)
    bottom = jnp.concatenate([zeros, taxi_n], axis=-1)
    adj = jnp.concatenate([top, bottom], axis=-2)            # (B, W, 2N, 2N)

    nodes = jnp.concatenate([bike_in, taxi_in], axis=-2)     # (B, W, 2N, F_in)
    weights = jnp.broadcast_to(gcn_weights[None], (B,) + gcn_weights.shape)
    return adj @ nodes @ weights                              # (B, W, 2N, F_out)


if __name__ == "__main__":
    batch_size, window_size, node_num = 2, 3, 8
    in_features, out_features = 16, 32

    key = jax.random.PRNGKey(0)
    k_bx, k_ba, k_tx, k_ta, k_w = jax.random.split(key, 5)

    bike_in = jax.random.normal(
        k_bx, (batch_size, window_size, node_num, in_features), jnp.float32)
    taxi_in = jax.random.normal(
        k_tx, (batch_size, window_size, node_num, in_features), jnp.float32)
    # Non-negative adjacencies so rowsum^-0.5 is well defined (same domain as
    # the PyTorch reference's pow(-0.5)).
    bike_adj = jax.random.uniform(
        k_ba, (batch_size, window_size, node_num, node_num), jnp.float32)
    taxi_adj = jax.random.uniform(
        k_ta, (batch_size, window_size, node_num, node_num), jnp.float32)

    # Deterministic xavier-uniform init of GraphConvolution.weights
    # (torch fan_in/fan_out convention for a 3D tensor (W, F_in, F_out)).
    fan_in = in_features * out_features
    fan_out = window_size * out_features
    bound = math.sqrt(6.0 / (fan_in + fan_out))
    gcn_weights = jax.random.uniform(
        k_w, (window_size, in_features, out_features), jnp.float32,
        minval=-bound, maxval=bound)

    # crossA / crossB Parameters exist in __init__ but are unused in forward
    # (literal zeros are passed to merge_alladj), so they are omitted here.

    out = generator_rl_forward(bike_in, bike_adj, taxi_in, taxi_adj, gcn_weights)
    out = jax.block_until_ready(out)

    ref = _reference_forward(bike_in, bike_adj, taxi_in, taxi_adj, gcn_weights)
    assert out.shape == (batch_size, window_size, 2 * node_num, out_features)
    assert jnp.allclose(out, ref, atol=1e-4, rtol=1e-4)

    print("KERNEL_OK")
</pallas_src>

<mosaic_0001>
module attributes {stable_mosaic.version = 11 : i64} {
  func.func @_generator_rl_kernel(%arg0: i32, %arg1: memref<2x1x3x8x16xf32, #tpu.memory_space<vmem>>, %arg2: memref<2x1x3x8x8xf32, #tpu.memory_space<vmem>>, %arg3: memref<3x16x32xf32, #tpu.memory_space<vmem>>, %arg4: memref<1x3x16x32xf32, #tpu.memory_space<vmem>>) attributes {dimension_semantics = [#tpu.dimension_semantics<parallel>], iteration_bounds = array<i64: 2>, scalar_prefetch = 0 : i64, scratch_operands = 0 : i64, tpu.core_type = #tpu.core_type<tc>, window_params = [{transform_indices = @transform_0, window_bounds = array<i64: 2, 1, 3, 8, 16>}, {transform_indices = @transform_1, window_bounds = array<i64: 2, 1, 3, 8, 8>}, {pipeline_mode = #tpu.pipeline_mode<synchronous>, transform_indices = @transform_2, window_bounds = array<i64: 3, 16, 32>}, {transform_indices = @transform_3, window_bounds = array<i64: 1, 3, 16, 32>}]} {
    %c0 = arith.constant 0 : index
    %c0_0 = arith.constant 0 : index
    %c0_1 = arith.constant 0 : index
    %c0_2 = arith.constant 0 : index
    %c0_3 = arith.constant 0 : index
    %0 = vector.load %arg1[%c0, %c0_0, %c0_1, %c0_2, %c0_3] : memref<2x1x3x8x16xf32, #tpu.memory_space<vmem>>, vector<2x1x3x8x16xf32>
    %c0_4 = arith.constant 0 : index
    %c0_5 = arith.constant 0 : index
    %c0_6 = arith.constant 0 : index
    %c0_7 = arith.constant 0 : index
    %c0_8 = arith.constant 0 : index
    %1 = vector.load %arg2[%c0_4, %c0_5, %c0_6, %c0_7, %c0_8] : memref<2x1x3x8x8xf32, #tpu.memory_space<vmem>>, vector<2x1x3x8x8xf32>
    %2 = tpu.iota {dimensions = array<i32: 0>} : vector<8x8xi32>
    %3 = tpu.iota {dimensions = array<i32: 1>} : vector<8x8xi32>
    %4 = arith.cmpi eq, %2, %3 : vector<8x8xi32>
    %5 = arith.extui %4 : vector<8x8xi1> to vector<8x8xi32>
    %6 = arith.sitofp %5 : vector<8x8xi32> to vector<8x8xf32>
    %7 = vector.shape_cast %6 : vector<8x8xf32> to vector<1x1x1x8x8xf32>
    %8 = vector.broadcast %7 : vector<1x1x1x8x8xf32> to vector<2x1x3x8x8xf32>
    %9 = arith.addf %1, %8 : vector<2x1x3x8x8xf32>
    %cst = arith.constant dense<0.000000e+00> : vector<2x1x3x8xf32>
    %10 = vector.multi_reduction <add>, %9, %cst [4] : vector<2x1x3x8x8xf32> to vector<2x1x3x8xf32>
    %11 = vector.shape_cast %10 : vector<2x1x3x8xf32> to vector<2x1x3x8x1xf32>
    %12 = math.rsqrt %11 : vector<2x1x3x8x1xf32>
    %13 = vector.broadcast %12 : vector<2x1x3x8x1xf32> to vector<2x1x3x8x16xf32>
    %14 = arith.mulf %13, %0 : vector<2x1x3x8x16xf32>
    %15 = vector.extract_strided_slice %9 {offsets = [0, 0, 0, 0, 0], sizes = [2, 1, 3, 8, 1], strides = [1, 1, 1, 1, 1]} : vector<2x1x3x8x8xf32> to vector<2x1x3x8x1xf32>
    %16 = vector.extract_strided_slice %14 {offsets = [0, 0, 0, 0, 0], sizes = [2, 1, 3, 1, 16], strides = [1, 1, 1, 1, 1]} : vector<2x1x3x8x16xf32> to vector<2x1x3x1x16xf32>
    %17 = vector.broadcast %15 : vector<2x1x3x8x1xf32> to vector<2x1x3x8x16xf32>
    %18 = vector.broadcast %16 : vector<2x1x3x1x16xf32> to vector<2x1x3x8x16xf32>
    %19 = arith.mulf %17, %18 : vector<2x1x3x8x16xf32>
    %20 = vector.extract_strided_slice %9 {offsets = [0, 0, 0, 0, 1], sizes = [2, 1, 3, 8, 1], strides = [1, 1, 1, 1, 1]} : vector<2x1x3x8x8xf32> to vector<2x1x3x8x1xf32>
    %21 = vector.extract_strided_slice %14 {offsets = [0, 0, 0, 1, 0], sizes = [2, 1, 3, 1, 16], strides = [1, 1, 1, 1, 1]} : vector<2x1x3x8x16xf32> to vector<2x1x3x1x16xf32>
    %22 = vector.broadcast %20 : vector<2x1x3x8x1xf32> to vector<2x1x3x8x16xf32>
    %23 = vector.broadcast %21 : vector<2x1x3x1x16xf32> to vector<2x1x3x8x16xf32>
    %24 = arith.mulf %22, %23 : vector<2x1x3x8x16xf32>
    %25 = arith.addf %19, %24 : vector<2x1x3x8x16xf32>
    %26 = vector.extract_strided_slice %9 {offsets = [0, 0, 0, 0, 2], sizes = [2, 1, 3, 8, 1], strides = [1, 1, 1, 1, 1]} : vector<2x1x3x8x8xf32> to vector<2x1x3x8x1xf32>
    %27 = vector.extract_strided_slice %14 {offsets = [0, 0, 0, 2, 0], sizes = [2, 1, 3, 1, 16], strides = [1, 1, 1, 1, 1]} : vector<2x1x3x8x16xf32> to vector<2x1x3x1x16xf32>
    %28 = vector.broadcast %26 : vector<2x1x3x8x1xf32> to vector<2x1x3x8x16xf32>
    %29 = vector.broadcast %27 : vector<2x1x3x1x16xf32> to vector<2x1x3x8x16xf32>
    %30 = arith.mulf %28, %29 : vector<2x1x3x8x16xf32>
    %31 = arith.addf %25, %30 : vector<2x1x3x8x16xf32>
    %32 = vector.extract_strided_slice %9 {offsets = [0, 0, 0, 0, 3], sizes = [2, 1, 3, 8, 1], strides = [1, 1, 1, 1, 1]} : vector<2x1x3x8x8xf32> to vector<2x1x3x8x1xf32>
    %33 = vector.extract_strided_slice %14 {offsets = [0, 0, 0, 3, 0], sizes = [2, 1, 3, 1, 16], strides = [1, 1, 1, 1, 1]} : vector<2x1x3x8x16xf32> to vector<2x1x3x1x16xf32>
    %34 = vector.broadcast %32 : vector<2x1x3x8x1xf32> to vector<2x1x3x8x16xf32>
    %35 = vector.broadcast %33 : vector<2x1x3x1x16xf32> to vector<2x1x3x8x16xf32>
    %36 = arith.mulf %34, %35 : vector<2x1x3x8x16xf32>
    %37 = arith.addf %31, %36 : vector<2x1x3x8x16xf32>
    %38 = vector.extract_strided_slice %9 {offsets = [0, 0, 0, 0, 4], sizes = [2, 1, 3, 8, 1], strides = [1, 1, 1, 1, 1]} : vector<2x1x3x8x8xf32> to vector<2x1x3x8x1xf32>
    %39 = vector.extract_strided_slice %14 {offsets = [0, 0, 0, 4, 0], sizes = [2, 1, 3, 1, 16], strides = [1, 1, 1, 1, 1]} : vector<2x1x3x8x16xf32> to vector<2x1x3x1x16xf32>
    %40 = vector.broadcast %38 : vector<2x1x3x8x1xf32> to vector<2x1x3x8x16xf32>
    %41 = vector.broadcast %39 : vector<2x1x3x1x16xf32> to vector<2x1x3x8x16xf32>
    %42 = arith.mulf %40, %41 : vector<2x1x3x8x16xf32>
    %43 = arith.addf %37, %42 : vector<2x1x3x8x16xf32>
    %44 = vector.extract_strided_slice %9 {offsets = [0, 0, 0, 0, 5], sizes = [2, 1, 3, 8, 1], strides = [1, 1, 1, 1, 1]} : vector<2x1x3x8x8xf32> to vector<2x1x3x8x1xf32>
    %45 = vector.extract_strided_slice %14 {offsets = [0, 0, 0, 5, 0], sizes = [2, 1, 3, 1, 16], strides = [1, 1, 1, 1, 1]} : vector<2x1x3x8x16xf32> to vector<2x1x3x1x16xf32>
    %46 = vector.broadcast %44 : vector<2x1x3x8x1xf32> to vector<2x1x3x8x16xf32>
    %47 = vector.broadcast %45 : vector<2x1x3x1x16xf32> to vector<2x1x3x8x16xf32>
    %48 = arith.mulf %46, %47 : vector<2x1x3x8x16xf32>
    %49 = arith.addf %43, %48 : vector<2x1x3x8x16xf32>
    %50 = vector.extract_strided_slice %9 {offsets = [0, 0, 0, 0, 6], sizes = [2, 1, 3, 8, 1], strides = [1, 1, 1, 1, 1]} : vector<2x1x3x8x8xf32> to vector<2x1x3x8x1xf32>
    %51 = vector.extract_strided_slice %14 {offsets = [0, 0, 0, 6, 0], sizes = [2, 1, 3, 1, 16], strides = [1, 1, 1, 1, 1]} : vector<2x1x3x8x16xf32> to vector<2x1x3x1x16xf32>
    %52 = vector.broadcast %50 : vector<2x1x3x8x1xf32> to vector<2x1x3x8x16xf32>
    %53 = vector.broadcast %51 : vector<2x1x3x1x16xf32> to vector<2x1x3x8x16xf32>
    %54 = arith.mulf %52, %53 : vector<2x1x3x8x16xf32>
    %55 = arith.addf %49, %54 : vector<2x1x3x8x16xf32>
    %56 = vector.extract_strided_slice %9 {offsets = [0, 0, 0, 0, 7], sizes = [2, 1, 3, 8, 1], strides = [1, 1, 1, 1, 1]} : vector<2x1x3x8x8xf32> to vector<2x1x3x8x1xf32>
    %57 = vector.extract_strided_slice %14 {offsets = [0, 0, 0, 7, 0], sizes = [2, 1, 3, 1, 16], strides = [1, 1, 1, 1, 1]} : vector<2x1x3x8x16xf32> to vector<2x1x3x1x16xf32>
    %58 = vector.broadcast %56 : vector<2x1x3x8x1xf32> to vector<2x1x3x8x16xf32>
    %59 = vector.broadcast %57 : vector<2x1x3x1x16xf32> to vector<2x1x3x8x16xf32>
    %60 = arith.mulf %58, %59 : vector<2x1x3x8x16xf32>
    %61 = arith.addf %55, %60 : vector<2x1x3x8x16xf32>
    %62 = vector.broadcast %12 : vector<2x1x3x8x1xf32> to vector<2x1x3x8x16xf32>
    %63 = arith.mulf %62, %61 : vector<2x1x3x8x16xf32>
    %64 = vector.extract_strided_slice %63 {offsets = [0, 0, 0, 0, 0], sizes = [2, 1, 1, 8, 16], strides = [1, 1, 1, 1, 1]} : vector<2x1x3x8x16xf32> to vector<2x1x1x8x16xf32>
    %65 = vector.shape_cast %64 : vector<2x1x1x8x16xf32> to vector<2x1x8x16xf32>
    %66 = vector.shape_cast %65 : vector<2x1x8x16xf32> to vector<16x16xf32>
    %c0_9 = arith.constant 0 : index
    %c0_10 = arith.constant 0 : index
    %c0_11 = arith.constant 0 : index
    %67 = vector.load %arg3[%c0_9, %c0_10, %c0_11] : memref<3x16x32xf32, #tpu.memory_space<vmem>>, vector<1x16x32xf32>
    %68 = vector.shape_cast %67 : vector<1x16x32xf32> to vector<16x32xf32>
    %cst_12 = arith.constant dense<0.000000e+00> : vector<16x32xf32>
    %69 = tpu.matmul %66, %68, %cst_12 {dimension_numbers = #tpu.dot_dimension_numbers<[1], [0], [0], [1], [0, 0, 1, 1], [], []>} : vector<16x16xf32>, vector<16x32xf32>, vector<16x32xf32> -> vector<16x32xf32>
    %70 = vector.shape_cast %69 : vector<16x32xf32> to vector<2x1x8x32xf32>
    %71 = vector.extract_strided_slice %70 {offsets = [0, 0, 0, 0], sizes = [1, 1, 8, 32], strides = [1, 1, 1, 1]} : vector<2x1x8x32xf32> to vector<1x1x8x32xf32>
    %72 = vector.shape_cast %71 : vector<1x1x8x32xf32> to vector<1x8x32xf32>
    %c0_13 = arith.constant 0 : index
    %c0_14 = arith.constant 0 : index
    %c0_15 = arith.constant 0 : index
    %c0_16 = arith.constant 0 : index
    %73 = vector.load %arg4[%c0_13, %c0_14, %c0_15, %c0_16] : memref<1x3x16x32xf32, #tpu.memory_space<vmem>>, vector<1x1x8x32xf32>
    %74 = vector.shape_cast %73 : vector<1x1x8x32xf32> to vector<1x8x32xf32>
    %75 = vector.shape_cast %72 : vector<1x8x32xf32> to vector<1x1x8x32xf32>
    tpu.vector_store %arg4[%c0_13, %c0_14, %c0_15, %c0_16], %75 {strides = array<i32>} : memref<1x3x16x32xf32, #tpu.memory_space<vmem>>, vector<1x1x8x32xf32>,
    %76 = vector.extract_strided_slice %70 {offsets = [1, 0, 0, 0], sizes = [1, 1, 8, 32], strides = [1, 1, 1, 1]} : vector<2x1x8x32xf32> to vector<1x1x8x32xf32>
    %77 = vector.shape_cast %76 : vector<1x1x8x32xf32> to vector<1x8x32xf32>
    %c0_17 = arith.constant 0 : index
    %c0_18 = arith.constant 0 : index
    %c8 = arith.constant 8 : index
    %c0_19 = arith.constant 0 : index
    %78 = vector.load %arg4[%c0_17, %c0_18, %c8, %c0_19] : memref<1x3x16x32xf32, #tpu.memory_space<vmem>>, vector<1x1x8x32xf32>
    %79 = vector.shape_cast %78 : vector<1x1x8x32xf32> to vector<1x8x32xf32>
    %80 = vector.shape_cast %77 : vector<1x8x32xf32> to vector<1x1x8x32xf32>
    tpu.vector_store %arg4[%c0_17, %c0_18, %c8, %c0_19], %80 {strides = array<i32>} : memref<1x3x16x32xf32, #tpu.memory_space<vmem>>, vector<1x1x8x32xf32>,
    %81 = vector.extract_strided_slice %63 {offsets = [0, 0, 1, 0, 0], sizes = [2, 1, 1, 8, 16], strides = [1, 1, 1, 1, 1]} : vector<2x1x3x8x16xf32> to vector<2x1x1x8x16xf32>
    %82 = vector.shape_cast %81 : vector<2x1x1x8x16xf32> to vector<2x1x8x16xf32>
    %83 = vector.shape_cast %82 : vector<2x1x8x16xf32> to vector<16x16xf32>
    %c1 = arith.constant 1 : index
    %c0_20 = arith.constant 0 : index
    %c0_21 = arith.constant 0 : index
    %84 = vector.load %arg3[%c1, %c0_20, %c0_21] : memref<3x16x32xf32, #tpu.memory_space<vmem>>, vector<1x16x32xf32>
    %85 = vector.shape_cast %84 : vector<1x16x32xf32> to vector<16x32xf32>
    %cst_22 = arith.constant dense<0.000000e+00> : vector<16x32xf32>
    %86 = tpu.matmul %83, %85, %cst_22 {dimension_numbers = #tpu.dot_dimension_numbers<[1], [0], [0], [1], [0, 0, 1, 1], [], []>} : vector<16x16xf32>, vector<16x32xf32>, vector<16x32xf32> -> vector<16x32xf32>
    %87 = vector.shape_cast %86 : vector<16x32xf32> to vector<2x1x8x32xf32>
    %88 = vector.extract_strided_slice %87 {offsets = [0, 0, 0, 0], sizes = [1, 1, 8, 32], strides = [1, 1, 1, 1]} : vector<2x1x8x32xf32> to vector<1x1x8x32xf32>
    %89 = vector.shape_cast %88 : vector<1x1x8x32xf32> to vector<1x8x32xf32>
    %c0_23 = arith.constant 0 : index
    %c1_24 = arith.constant 1 : index
    %c0_25 = arith.constant 0 : index
    %c0_26 = arith.constant 0 : index
    %90 = vector.load %arg4[%c0_23, %c1_24, %c0_25, %c0_26] : memref<1x3x16x32xf32, #tpu.memory_space<vmem>>, vector<1x1x8x32xf32>
    %91 = vector.shape_cast %90 : vector<1x1x8x32xf32> to vector<1x8x32xf32>
    %92 = vector.shape_cast %89 : vector<1x8x32xf32> to vector<1x1x8x32xf32>
    tpu.vector_store %arg4[%c0_23, %c1_24, %c0_25, %c0_26], %92 {strides = array<i32>} : memref<1x3x16x32xf32, #tpu.memory_space<vmem>>, vector<1x1x8x32xf32>,
    %93 = vector.extract_strided_slice %87 {offsets = [1, 0, 0, 0], sizes = [1, 1, 8, 32], strides = [1, 1, 1, 1]} : vector<2x1x8x32xf32> to vector<1x1x8x32xf32>
    %94 = vector.shape_cast %93 : vector<1x1x8x32xf32> to vector<1x8x32xf32>
    %c0_27 = arith.constant 0 : index
    %c1_28 = arith.constant 1 : index
    %c8_29 = arith.constant 8 : index
    %c0_30 = arith.constant 0 : index
    %95 = vector.load %arg4[%c0_27, %c1_28, %c8_29, %c0_30] : memref<1x3x16x32xf32, #tpu.memory_space<vmem>>, vector<1x1x8x32xf32>
    %96 = vector.shape_cast %95 : vector<1x1x8x32xf32> to vector<1x8x32xf32>
    %97 = vector.shape_cast %94 : vector<1x8x32xf32> to vector<1x1x8x32xf32>
    tpu.vector_store %arg4[%c0_27, %c1_28, %c8_29, %c0_30], %97 {strides = array<i32>} : memref<1x3x16x32xf32, #tpu.memory_space<vmem>>, vector<1x1x8x32xf32>,
    %98 = vector.extract_strided_slice %63 {offsets = [0, 0, 2, 0, 0], sizes = [2, 1, 1, 8, 16], strides = [1, 1, 1, 1, 1]} : vector<2x1x3x8x16xf32> to vector<2x1x1x8x16xf32>
    %99 = vector.shape_cast %98 : vector<2x1x1x8x16xf32> to vector<2x1x8x16xf32>
    %100 = vector.shape_cast %99 : vector<2x1x8x16xf32> to vector<16x16xf32>
    %c2 = arith.constant 2 : index
    %c0_31 = arith.constant 0 : index
    %c0_32 = arith.constant 0 : index
    %101 = vector.load %arg3[%c2, %c0_31, %c0_32] : memref<3x16x32xf32, #tpu.memory_space<vmem>>, vector<1x16x32xf32>
    %102 = vector.shape_cast %101 : vector<1x16x32xf32> to vector<16x32xf32>
    %cst_33 = arith.constant dense<0.000000e+00> : vector<16x32xf32>
    %103 = tpu.matmul %100, %102, %cst_33 {dimension_numbers = #tpu.dot_dimension_numbers<[1], [0], [0], [1], [0, 0, 1, 1], [], []>} : vector<16x16xf32>, vector<16x32xf32>, vector<16x32xf32> -> vector<16x32xf32>
    %104 = vector.shape_cast %103 : vector<16x32xf32> to vector<2x1x8x32xf32>
    %105 = vector.extract_strided_slice %104 {offsets = [0, 0, 0, 0], sizes = [1, 1, 8, 32], strides = [1, 1, 1, 1]} : vector<2x1x8x32xf32> to vector<1x1x8x32xf32>
    %106 = vector.shape_cast %105 : vector<1x1x8x32xf32> to vector<1x8x32xf32>
    %c0_34 = arith.constant 0 : index
    %c2_35 = arith.constant 2 : index
    %c0_36 = arith.constant 0 : index
    %c0_37 = arith.constant 0 : index
    %107 = vector.load %arg4[%c0_34, %c2_35, %c0_36, %c0_37] : memref<1x3x16x32xf32, #tpu.memory_space<vmem>>, vector<1x1x8x32xf32>
    %108 = vector.shape_cast %107 : vector<1x1x8x32xf32> to vector<1x8x32xf32>
    %109 = vector.shape_cast %106 : vector<1x8x32xf32> to vector<1x1x8x32xf32>
    tpu.vector_store %arg4[%c0_34, %c2_35, %c0_36, %c0_37], %109 {strides = array<i32>} : memref<1x3x16x32xf32, #tpu.memory_space<vmem>>, vector<1x1x8x32xf32>,
    %110 = vector.extract_strided_slice %104 {offsets = [1, 0, 0, 0], sizes = [1, 1, 8, 32], strides = [1, 1, 1, 1]} : vector<2x1x8x32xf32> to vector<1x1x8x32xf32>
    %111 = vector.shape_cast %110 : vector<1x1x8x32xf32> to vector<1x8x32xf32>
    %c0_38 = arith.constant 0 : index
    %c2_39 = arith.constant 2 : index
    %c8_40 = arith.constant 8 : index
    %c0_41 = arith.constant 0 : index
    %112 = vector.load %arg4[%c0_38, %c2_39, %c8_40, %c0_41] : memref<1x3x16x32xf32, #tpu.memory_space<vmem>>, vector<1x1x8x32xf32>
    %113 = vector.shape_cast %112 : vector<1x1x8x32xf32> to vector<1x8x32xf32>
    %114 = vector.shape_cast %111 : vector<1x8x32xf32> to vector<1x1x8x32xf32>
    tpu.vector_store %arg4[%c0_38, %c2_39, %c8_40, %c0_41], %114 {strides = array<i32>} : memref<1x3x16x32xf32, #tpu.memory_space<vmem>>, vector<1x1x8x32xf32>,
    return
  }
  func.func @transform_0(%arg0: i32) -> (i32, i32, i32, i32, i32) {
    %c0_i32 = arith.constant 0 : i32
    %c0_i32_0 = arith.constant 0 : i32
    %c0_i32_1 = arith.constant 0 : i32
    %c0_i32_2 = arith.constant 0 : i32
    %c0_i32_3 = arith.constant 0 : i32
    return %c0_i32, %arg0, %c0_i32_0, %c0_i32_1, %c0_i32_2 : i32, i32, i32, i32, i32
  }
  func.func @transform_1(%arg0: i32) -> (i32, i32, i32, i32, i32) {
    %c0_i32 = arith.constant 0 : i32
    %c0_i32_0 = arith.constant 0 : i32
    %c0_i32_1 = arith.constant 0 : i32
    %c0_i32_2 = arith.constant 0 : i32
    %c0_i32_3 = arith.constant 0 : i32
    return %c0_i32, %arg0, %c0_i32_0, %c0_i32_1, %c0_i32_2 : i32, i32, i32, i32, i32
  }
  func.func @transform_2(%arg0: i32) -> (i32, i32, i32) {
    %c0_i32 = arith.constant 0 : i32
    %c0_i32_0 = arith.constant 0 : i32
    %c0_i32_1 = arith.constant 0 : i32
    %c0_i32_2 = arith.constant 0 : i32
    return %c0_i32, %c0_i32_0, %c0_i32_1 : i32, i32, i32
  }
  func.func @transform_3(%arg0: i32) -> (i32, i32, i32, i32) {
    %c0_i32 = arith.constant 0 : i32
    %c0_i32_0 = arith.constant 0 : i32
    %c0_i32_1 = arith.constant 0 : i32
    %c0_i32_2 = arith.constant 0 : i32
    return %arg0, %c0_i32, %c0_i32_0, %c0_i32_1 : i32, i32, i32, i32
  }
}

</mosaic_0001>

<bundles_post_ra>
// kernel: tpu_custom_call.1
= control target key start
LH: loop header
LB: loop body
LE: loop exit
PB: predicated region body
PF: predicated region fallthrough
CT: control target
= control target key end

     0   :  { %8 = vsyncpa [#allocation3], 0  ;;  %s2136_s0 = inlined_call_operand.hbm [shape: f32[2,2,3,8,16], index: 0, kind: input, shape index: {}]   ;;  %s2137_s1 = inlined_call_operand.hbm [shape: f32[2,2,3,8,8], index: 1, kind: input, shape index: {}]   ;;  %s2138_s2 = inlined_call_operand.hbm [shape: f32[3,16,32], index: 2, kind: input, shape index: {}]   ;;  %s2139_s3 = inlined_call_operand.hbm [shape: f32[2,3,16,32], index: 3, kind: output, shape index: {}]  }
   0x1   :  { %10 = vsyncpa [#allocation3 + $0x1], 0 }
   0x2   :  { %11 = vsyncpa [#allocation6], 0 }
   0x3   :  { %13 = vsyncpa [#allocation6 + $0x1], 0 }
   0x4   :  { %14 = vsyncpa [#allocation4], 0 }
   0x5   :  { %16 = vsyncpa [#allocation4 + $0x1], 0  ;;  %s1574_s12 = smov 0   ;;  %s1576_s13 = smov 0  }
   0x6   :  { %s1578_s14 = smov 0   ;;  %s1580_s15 = smov 0  }
   0x7 LB: > { %s1595_s16 = sadd.s32 4294967295, %s1525_s15   ;;  %s1215_s17 = sadd.s32 4294967294, %s1525_s15   ;;  %s1525_s15 = sphi %s1580_s15, %s2170_s15   ;;  %s1521_s14 = sphi %s1578_s14, %s2169_s14   ;;  %s1517_s13 = sphi %s1576_s13, %s2168_s13   ;;  %s1513_s12 = sphi %s1574_s12, %s2167_s12  }
   0x8   : > { %s1599_s18 = sadd.s32 1, %s1525_s15   ;;  %s29_s19 = sadd.s32 1, %s1521_s14 }
   0x9   : > { %s26_s20 = ssub.s32 %s1525_s15, %s1599_s18  ;;  %p36_p0 = scmp.ne.s32.totalorder %s1521_s14, %s1517_s13 }
   0xa   : > { %p27_p1 = scmp.eq.s32.totalorder %s26_s20, 0  ;;  %p37_p2 = scmp.eq.s32.totalorder %s1525_s15, 0 }
   0xb   : > { %p42_p3 = scmp.ne.s32.totalorder %s1517_s13, %s1513_s12  ;;  %p2140_p4 = scmp.eq.s32.totalorder %s1595_s16, 0 }
   0xc   : > { %s1611_s21 = scalar_select %p27_p1, %s1521_s14, %s29_s19  }
   0xd   : > { %p1613_p5 = por %p37_p2, %p36_p0  ;;  %p1619_p6 = por %p2140_p4, %p42_p3 }
   0xe   : > { %p113_p7 = scmp.eq.s32.totalorder %s1595_s16, 1  ;;  %p119_p8 = scmp.eq.s32.totalorder %s1215_s17, 1 }
   0xf   : > { %s2145_s22 = scalar_select %p1613_p5, 1, 0 }
  0x10   : > { %s2146_s23 = scalar_select %p1619_p6, 1, 0 }
  0x11   : > { %p1216_p9 = scmp.ge.s32.totalorder %s1525_s15, 1  ;;  %p126_p10 = scmp.lt.s32.totalorder %s1525_s15, 3 }
  0x12   : > { %p1626_p11 = por %p113_p7, %p36_p0  ;;  %p1630_p12 = por %p119_p8, %p42_p3 }
  0x13   : > { %p1634_p13 = pnand %p1216_p9, %p126_p10  ;;  %s1527_s27 = smov [#allocation7]  }
  0x14   : > { %s2147_s24 = scalar_select %p1626_p11, 1, 0 }
  0x15   : > { %s2148_s25 = scalar_select %p1630_p12, 1, 0 }
  0x16   : > { %s2149_s26 = scalar_select %p1634_p13, 1, 0 }
  0x17   : > { %p1316_p1 = pneg %p1634_p13  ;;  %s138_s28 = sshll.u32 %s1527_s27, 4  ;;  %s139_s28 = int_to_ptr.vmem [resolvable:$true] %s138_s28 }
  0x18   : > { %s1423_s5 = scalar_lea.hbm %s2138_s2, 768 }
  0x19   : > { %p1642_p2 = pnand %p1316_p1, %p2140_p4  ;;  %p1424_p0 = scmp.ne.s32.totalorder %s2138_s2, %s1423_s5 }
  0x1a   : > { %p1430_p9 = scmp.lt.u32.totalorder %s1423_s5, %s2138_s2 }
  0x1b   : > { %p1425_p3 = pneg %p1642_p2 }
  0x1d   : > { %p1426_p7 = pnand %p1425_p3, %p1424_p0 }
  0x1f   : > { %p1427_p8 = pneg %p1426_p7 }
  0x21   : > { %p1432_p10 = pnand %p1430_p9, %p1427_p8 }
  0x23   : > { %1435 = shalt.err (!%p1432_p10)
}
  0x24   : > { %s1436_s10 = scalar_lea.vmem %s139_s28, 768  ;;  %p1444_p11 = scmp.lt.s32.totalorder %s139_s28, %s139_s28 }
  0x25   : > { %p1437_p1 = scmp.ne.s32.totalorder %s139_s28, %s1436_s10  ;;  %p1445_p6 = scmp.lt.s32.totalorder %s1436_s10, %s1436_s10 }
  0x27   : > { %p1439_p4 = pnand %p1437_p1, %p1425_p3  ;;  %p1446_p13 = por %p1445_p6, %p1444_p11 }
  0x29   : > { %p1440_p12 = pneg %p1439_p4 }
  0x2b   : > { %p1447_p5 = pnand %p1446_p13, %p1440_p12 }
  0x2d   : > { %1450 = shalt.err (!%p1447_p5)
}
  0x2e   : > { %s1528_s11 = smov 128   ;;  %s1529_s17 = smov 8  }
  0x2f   : > { %1319 = dma.hbm_to_vmem [thread:$0]  (!%p1642_p2), %s2138_s2, 768, %s139_s28, [#allocation6], %s1528_s11, %s1528_s11, %s1529_s17  }
  0x30   : > { %p1218_p0 = scmp.ge.s32.totalorder %s1525_s15, 2 }
  0x32   : > { %148 = sbr.rel (%p1218_p0) target bundleno = 85 (0x55), region = 20 }
  0x39   : > { %s152_s27 = sand.u32 1, %s1521_s14   ;;  %s1287_s30 = smul.u32 384, %s1525_s15 }
  0x3a   : > { %s1286_s29 = smul.u32 48, %s152_s27  ;;  %s1530_s4 = smov 768  }
  0x3b   : > { %p2151_p4 = scmp.ne.s32.totalorder %s2145_s22, 0  ;;  %s162_s7 = scalar_lea.hbm %s2136_s0, %s1287_s30 }
  0x3c   : > { %s156_s9 = scalar_lea.vmem [#allocation2], %s1286_s29  ;;  %s1531_s11 = smov 384  }
  0x3d   : > { %1295 = sst [smem:[#allocation10]] (%p2151_p4), %s1530_s4  ;;  %s175_s10 = sshll.u32 %s156_s9, 4  ;;  %s176_s10 = int_to_ptr.vmem [resolvable:$true] %s175_s10 }
  0x3e   : > { %s1294_s28 = scalar_select %p2151_p4, [#allocation0], [#allocation13] }
  0x3f   : > { %1296 = sst [smem:[#allocation10 + $0x1]] (%p2151_p4), %s1531_s11  ;;  %s1532_s17 = smov 3  }
  0x40   : > { %s167_s8 = sld [smem:[%s1294_s28]]   ;;  %s1533_s19 = smov 128  }
  0x41   : > { %1297 = sst [smem:[#allocation10 + $0x2]] (%p2151_p4), %s1532_s17  ;;  %s1534_s20 = smov 8  }
  0x42   : > { %1298 = sst [smem:[#allocation10 + $0x3]] (%p2151_p4), %s1533_s19  ;;  %s153_s5 = scalar_lea.sflag [#allocation3], %s152_s27 }
  0x43   : > { %1299 = sst [smem:[#allocation10 + $0x4]] (%p2151_p4), %s1533_s19  ;;  %s1535_s6 = smov [#allocation9]  }
  0x44   : > { %1300 = sst [smem:[#allocation10 + $0x5]] (%p2151_p4), %s1534_s20 }
  0x46   : > { %s1220_s4 = sshll.u32 %s167_s8, 26 }
  0x47   : > { %s1221_s28 = sadd.s32 134217728, %s1220_s4 }
  0x48   : > { %1301 = dma.general (%p2151_p4), %s162_s7, 768, %s176_s10, %s153_s5, %s1535_s6, [#allocation10], %s1221_s28, 0  }
  0x49   : > { %s198_s9 = sand.u32 1, %s1525_s15   ;;  %s208_s19 = scalar_lea.hbm %s2137_s1, %s1287_s30 }
  0x4a   : > { %s1302_s20 = scalar_select %p2151_p4, [#allocation0], [#allocation14] }
  0x4b   : > { %s202_s8 = scalar_lea.vmem [#allocation5], %s1286_s29  ;;  %s1536_s7 = smov 768  }
  0x4c   : > { %s221_s27 = sshll.u32 %s202_s8, 4  ;;  %s213_s4 = sld [smem:[%s1302_s20]]   ;;  %s222_s27 = int_to_ptr.vmem [resolvable:$true] %s221_s27 }
  0x4d   : > { %1303 = sst [smem:[#allocation12]] (%p2151_p4), %s1536_s7  ;;  %s1537_s10 = smov 384  }
  0x4e   : > { %1304 = sst [smem:[#allocation12 + $0x1]] (%p2151_p4), %s1537_s10  ;;  %s1538_s28 = smov 3  }
  0x4f   : > { %1305 = sst [smem:[#allocation12 + $0x2]] (%p2151_p4), %s1538_s28  ;;  %s1539_s5 = smov 128  }
  0x50   : > { %1306 = sst [smem:[#allocation12 + $0x3]] (%p2151_p4), %s1539_s5  ;;  %s1540_s29 = smov 8  }
  0x51   : > { %1307 = sst [smem:[#allocation12 + $0x4]] (%p2151_p4), %s1539_s5  ;;  %s199_s11 = scalar_lea.sflag [#allocation6], %s198_s9 }
  0x52   : > { %s1223_s30 = sshll.u32 %s213_s4, 26  ;;  %1308 = sst [smem:[#allocation12 + $0x5]] (%p2151_p4), %s1540_s29 }
  0x53   : > { %s1224_s6 = sadd.s32 134217728, %s1223_s30  ;;  %s1541_s17 = smov [#allocation11]  }
  0x54   : > { %1309 = dma.general (%p2151_p4), %s208_s19, 768, %s222_s27, %s199_s11, %s1541_s17, [#allocation12], %s1224_s6, 0  }
  0x55 PF: > { %p2152_p5 = scmp.ne.s32.totalorder %s2149_s26, 0 }
  0x56   : > { %s1709_s20 = sand.u32 (!%p2152_p5), 1, %s1517_s13   ;;  %p2153_p6 = scmp.ne.s32.totalorder (!%p2152_p5), %s2146_s23, 0 }
  0x57   : > { %246 = sbr.rel (%p2152_p5) target bundleno = 640 (0x280), region = 32  ;;  %s249_s4 = scalar_lea.sflag (!%p2152_p5), [#allocation3], %s1709_s20 }
  0x58   : > { %s1712_s8 = smul.u32 (!%p2152_p5), 48, %s1709_s20 }
  0x5a   : > { %s1716_s7 = scalar_lea.vmem (!%p2152_p5), [#allocation2], %s1712_s8 }
  0x5e   : > { %1496 = dma.done.wait (%p2153_p6), %s249_s4, 768  }
  0x5f   : > { %1498 = vsyncadd (%p2153_p6), %s249_s4, 4294966528  ;;  %s257_s22 = sand.u32 1, %s1595_s16   ;;  %s261_s9 = scalar_lea.vmem [#allocation5], %s1712_s8 }
  0x60   : > { %s258_s26 = scalar_lea.sflag [#allocation6], %s257_s22 }
  0x61   : > { %1500 = dma.done.wait (%p2153_p6), %s258_s26, 768  }
  0x62   : > { %1502 = vsyncadd (%p2153_p6), %s258_s26, 4294966528  ;;  %p2154_p11 = scmp.eq.s32.totalorder %s1595_s16, 0 }
  0x64   : > { %1504 = dma.done.wait (%p2154_p11), [#allocation6], 768   ;;  %p2155_p12 = pmov %p2154_p11 }
  0x65   : > { %v305_v0 = vlaneseq  ;;  %v1542_v1 = vmov 1   ;;  %v1543_v4 = vmov 0.0   ;;  %v300_v6 = vld [vmem:[%s261_s9 + $0x8] sm:$0xff]  ;;  %vm318_vm1 = vcmask 64512   ;;  %v299_v7 = vld [vmem:[%s261_s9] sm:$0xff]  ;;  %v301_v8 = vld [vmem:[%s261_s9 + $0x10] sm:$0xff] }
  0x66   : > { %1506 = vsyncadd (%p2155_p12), [#allocation6], 4294966528  ;;  %1385 = vset.pattern.permute.xlu1 %v1542_v1  ;;  %1391 = vset.pattern.permute.xlu0 %v1542_v1  ;;  %v302_v12 = vld [vmem:[%s261_s9 + $0x18] sm:$0xff]  ;;  %v304_v14 = vld [vmem:[%s261_s9 + $0x28] sm:$0xff]  ;;  %v1544_v24 = vmov 0   ;;  %v1545_v25 = vmov 2  }
  0x67   : > { %v1734_v2 = vshrl.u32 %v305_v0, 7  ;;  %v308_v3 = vand.u32 127, %v305_v0  ;;  %v303_v15 = vld [vmem:[%s261_s9 + $0x20] sm:$0xff]  ;;  %v1546_v26 = vmov 3   ;;  %v1547_v27 = vmov 4   ;;  %v836_v32 = vld [vmem:[#allocation7 + $0x8] sm:$0xff] }
  0x68   : > { %v1548_v28 = vmov 6   ;;  %v1549_v29 = vmov 7   ;;  %v1550_v30 = vmov 5   ;;  %v835_v31 = vld [vmem:[#allocation7] sm:$0xff]  ;;  %v294_v39 = vld [vmem:[%s1716_s7 + $0x8] sm:$0xff]  ;;  %v296_v54 = vld [vmem:[%s1716_s7 + $0x18] sm:$0xff] }
  0x69   : > { %vm309_vm0 = vcmp.eq.s32.totalorder %v1734_v2, %v308_v3  ;;  %v1274_v33 = vpack.c.bf16 %v836_v32, %v835_v31  ;;  %v1810_v40 = vsub.s32 1, %v1734_v2  ;;  %v293_v42 = vld [vmem:[%s1716_s7] sm:$0xff]  ;;  %v1815_v43 = vsub.s32 0, %v1734_v2  ;;  %v295_v52 = vld [vmem:[%s1716_s7 + $0x10] sm:$0xff]  ;;  %s292_s23 = scalar_lea.vmem [#allocation8], %s1712_s8  ;;  %s1291_s27 = smul.u32 768, %s1595_s16 }
  0x6a   : > { %v1227_v5 = vsel %vm309_vm0, 1.0, %v1543_v4  ;;  %v1818_v44 = vsub.s32 2, %v1734_v2  ;;  %v1821_v45 = vsub.s32 4, %v1734_v2  ;;  %v1831_v50 = vsub.s32 7, %v1734_v2  ;;  %v923_v3 = vld [vmem:[#allocation7 + $0x10] sm:$0xff]  ;;  %s1110_s19 = sshll.u32 %s292_s23, 4  ;;  %s2083_s19 = int_to_ptr.vmem [resolvable:$true] %s1110_s19 }
  0x6b   : > { %v1737_v9 = vadd.f32 %v1227_v5, %v300_v6  ;;  %v1739_v10 = vadd.f32 %v1227_v5, %v299_v7  ;;  %v1741_v11 = vadd.f32 %v1227_v5, %v301_v8  ;;  %v1743_v13 = vadd.f32 %v1227_v5, %v302_v12  ;;  %1275 = vmatprep.subr.bf16.mxu0 %v1274_v33  ;;  %s2090_s5 = scalar_lea.hbm %s2139_s3, %s1291_s27  ;;  %s1097_s16 = scalar_lea.sflag [#allocation4], %s1709_s20 }
  0x6c   : > { %v1753_v20 = vadd.f32 %v1227_v5, %v304_v14  ;;  %v1755_v21 = vadd.f32 %v1227_v5, %v303_v15  ;;  %1277 = vmatpush3.bf16.msra.mxu0 %v1274_v33  ;;  %v1838_v53 = vsub.s32 3, %v1734_v2  ;;  %v298_v5 = vld [vmem:[%s1716_s7 + $0x28] sm:$0xff]  ;;  %vm837_vm2 = vcmask 130048   ;;  %s1451_s30 = scalar_lea.vmem %s2083_s19, 768  ;;  %p2165_p2 = scmp.ne.s32.totalorder %s2147_s24, 0 }
  0x6d   : > { %v322_v16 = vsel %vm318_vm1, %v1737_v9, 0.0  ;;  %v319_v17 = vsel %vm318_vm1, %v1739_v10, 0.0  ;;  %v325_v18 = vsel %vm318_vm1, %v1741_v11, 0.0  ;;  %v328_v19 = vsel %vm318_vm1, %v1743_v13, 0.0  ;;  %p1452_p13 = scmp.ne.s32.totalorder %s2083_s19, %s1451_s30  ;;  %s1551_s29 = smov [#allocation8]  }
  0x6e   : > { %323 = vadd.xlane.f32.xlu1 %v322_v16  ;;  %320 = vadd.xlane.f32.xlu0 %v319_v17  ;;  %v334_v22 = vsel %vm318_vm1, %v1753_v20, 0.0  ;;  %v331_v23 = vsel %vm318_vm1, %v1755_v21, 0.0  ;;  %vm919_vm3 = vcmask 261120   ;;  %s1455_s6 = sshll.u32 %s1551_s29, 4  ;;  %s1456_s6 = int_to_ptr.vmem [resolvable:$false] %s1455_s6 }
  0x6f   : > { %p1453_p3 = pnand %p1452_p13, %p2165_p2  ;;  %s1457_s11 = scalar_lea.vmem %s1456_s6, 1536 }
  0x70   : > { %p1458_p8 = scmp.lt.s32.totalorder %s2083_s19, %s1456_s6  ;;  %p1459_p9 = scmp.lt.s32.totalorder %s1457_s11, %s1451_s30 }
  0x71   : > { %p1454_p7 = pneg %p1453_p3 }
  0x72   : > { %326 = vadd.xlane.f32.xlu1 %v325_v18  ;;  %329 = vadd.xlane.f32.xlu0 %v328_v19  ;;  %p1460_p10 = por %p1459_p9, %p1458_p8 }
  0x74   : > { %p1461_p1 = pnand %p1460_p10, %p1454_p7 }
  0x76   : > { %335 = vadd.xlane.f32.xlu1 %v334_v22  ;;  %332 = vadd.xlane.f32.xlu0 %v331_v23  ;;  %v1896_v22 = vsub.s32 5, %v1734_v2 }
  0x87   : > { %410 = vperm.xlu1 %1385, %v1739_v10  }
  0x8b   : > { %1386 = vset.pattern.permute.xlu1 %v1544_v24 }
  0x8c   : > { %366 = vperm.xlu1 %1386, %v1743_v13   ;;  %418 = vperm.xlu0 %1391, %v1741_v11  }
  0x90   : > { %1387 = vset.pattern.permute.xlu1 %v1542_v1  ;;  %1392 = vset.pattern.permute.xlu0 %v1544_v24 }
  0x91   : > { %422 = vperm.xlu1 %1387, %v1743_v13   ;;  %351 = vperm.xlu0 %1392, %v1739_v10  }
  0x95   : > { %1388 = vset.pattern.permute.xlu1 %v1545_v25  ;;  %376 = vperm.xlu0 %1392, %v1753_v20  }
  0x96   : > { %470 = vperm.xlu1 %1388, %v1739_v10  }
  0x99   : > { %1396 = vset.pattern.permute.xlu0 %v1546_v26 }
  0x9a   : > { %482 = vperm.xlu1 %1388, %v1743_v13   ;;  %542 = vperm.xlu0 %1396, %v1743_v13  }
  0x9e   : > { %1389 = vset.pattern.permute.xlu1 %v1544_v24  ;;  %538 = vperm.xlu0 %1396, %v1741_v11  }
  0x9f   : > { %356 = vperm.xlu1 %1389, %v1737_v9  }
  0xa2   : > { %550 = vperm.xlu0 %1396, %v1753_v20  }
  0xa3   : > { %361 = vperm.xlu1 %1389, %v1741_v11  }
  0xa6   : > { %1401 = vset.pattern.permute.xlu0 %v1547_v27 }
  0xa7   : > { %1390 = vset.pattern.permute.xlu1 %v1542_v1  ;;  %590 = vperm.xlu0 %1401, %v1739_v10  }
  0xa8   : > { %414 = vperm.xlu1 %1390, %v1737_v9  }
  0xab   : > { %602 = vperm.xlu0 %1401, %v1743_v13  }
  0xac   : > { %1393 = vset.pattern.permute.xlu1 %v1546_v26 }
  0xad   : > { %530 = vperm.xlu1 %1393, %v1739_v10  }
  0xaf   : > { %594 = vperm.xlu0 %1401, %v1737_v9  }
  0xb1   : > { %1394 = vset.pattern.permute.xlu1 %v1544_v24 }
  0xb2   : > { %371 = vperm.xlu1 %1394, %v1755_v21  }
  0xb3   : > { %606 = vperm.xlu0 %1401, %v1755_v21  }
  0xb6   : > { %1395 = vset.pattern.permute.xlu1 %v1542_v1  ;;  %v1860_v1 = vsub.s32 6, %v1734_v2 }
  0xb7   : > { %426 = vperm.xlu1 %1395, %v1755_v21   ;;  %1406 = vset.pattern.permute.xlu0 %v1548_v28 }
  0xb8   : > { %722 = vperm.xlu0 %1406, %v1743_v13  }
  0xbb   : > { %430 = vperm.xlu1 %1395, %v1753_v20  }
  0xbc   : > { %718 = vperm.xlu0 %1406, %v1741_v11  }
  0xbf   : > { %1397 = vset.pattern.permute.xlu1 %v1545_v25 }
  0xc0   : > { %474 = vperm.xlu1 %1397, %v1737_v9   ;;  %1409 = vset.pattern.permute.xlu0 %v1549_v29 }
  0xc1   : > { %770 = vperm.xlu0 %1409, %v1739_v10  }
  0xc4   : > { %478 = vperm.xlu1 %1397, %v1741_v11  }
  0xc5   : > { %782 = vperm.xlu0 %1409, %v1743_v13  }
  0xc8   : > { %486 = vperm.xlu1 %1397, %v1755_v21  }
  0xc9   : > { %774 = vperm.xlu0 %1409, %v1737_v9  }
  0xcc   : > { %490 = vperm.xlu1 %1397, %v1753_v20  }
  0xcd   : > { %790 = vperm.xlu0 %1409, %v1753_v20  }
  0xd0   : > { %1398 = vset.pattern.permute.xlu1 %v1546_v26 }
  0xd1   : > { %534 = vperm.xlu1 %1398, %v1737_v9  }
  0xd5   : > { %1399 = vset.pattern.permute.xlu1 %v1550_v30 }
  0xd6   : > { %650 = vperm.xlu1 %1399, %v1739_v10  }
  0xda   : > { %1400 = vset.pattern.permute.xlu1 %v1546_v26 }
  0xdb   : > { %546 = vperm.xlu1 %1400, %v1755_v21  }
  0xdf   : > { %1402 = vset.pattern.permute.xlu1 %v1550_v30 }
  0xe0   : > { %662 = vperm.xlu1 %1402, %v1743_v13  }
  0xe4   : > { %1403 = vset.pattern.permute.xlu1 %v1547_v27 }
  0xe5   : > { %598 = vperm.xlu1 %1403, %v1741_v11  }
  0xe9   : > { %1404 = vset.pattern.permute.xlu1 %v1548_v28 }
  0xea   : > { %710 = vperm.xlu1 %1404, %v1739_v10  }
  0xee   : > { %1405 = vset.pattern.permute.xlu1 %v1547_v27 }
  0xef   : > { %610 = vperm.xlu1 %1405, %v1753_v20  }
  0xf3   : > { %1407 = vset.pattern.permute.xlu1 %v1550_v30 }
  0xf4   : > { %654 = vperm.xlu1 %1407, %v1737_v9  }
  0xf8   : > { %658 = vperm.xlu1 %1407, %v1741_v11  }
  0xfb   : > { %v324_v34 = vpop.xlane.xlu1 %323  ;;  %v321_v35 = vpop.xlane.xlu0 %320 }
  0xfc   : > { %1411 = vrsqrt.f32 %v324_v34  ;;  %666 = vperm.xlu1 %1407, %v1755_v21  }
  0xfd   : > { %1413 = vrsqrt.f32 %v321_v35 }
  0xff   : > { %v327_v36 = vpop.xlane.xlu1 %326  ;;  %v330_v37 = vpop.xlane.xlu0 %329 }
 0x100   : > { %1415 = vrsqrt.f32 %v327_v36  ;;  %670 = vperm.xlu1 %1407, %v1753_v20  }
 0x101   : > { %1417 = vrsqrt.f32 %v330_v37 }
 0x103   : > { %v336_v38 = vpop.xlane.xlu1 %335  ;;  %v333_v41 = vpop.xlane.xlu0 %332 }
 0x104   : > { %1419 = vrsqrt.f32 %v336_v38  ;;  %1408 = vset.pattern.permute.xlu1 %v1548_v28 }
 0x105   : > { %714 = vperm.xlu1 %1408, %v1737_v9   ;;  %1421 = vrsqrt.f32 %v333_v41  ;;  %v297_v9 = vld [vmem:[%s1716_s7 + $0x20] sm:$0xff] }
 0x106   : > { %v1823_v46 = vpop.eup %1411 }
 0x107   : > { %v1825_v47 = vpop.eup %1413  ;;  %v1828_v48 = vmul.f32 %v1823_v46, %v294_v39  ;;  %v411_v49 = vpop.permute.xlu1 %410 }
 0x108   : > { %v1834_v51 = vmul.f32 %v1825_v47, %v293_v42 }
 0x109   : > { %726 = vperm.xlu1 %1408, %v1755_v21   ;;  %v386_v55 = vrot.slane %v1828_v48, %v1815_v43  ;;  %v440_v56 = vrot.slane %v1828_v48, %v1810_v40  ;;  %v620_v57 = vrot.slane %v1828_v48, %v1821_v45  ;;  %v500_v58 = vrot.slane %v1828_v48, %v1818_v44 }
 0x10a   : > { %v1850_v59 = vpop.eup %1415  ;;  %v436_v60 = vrot.slane %v1834_v51, %v1810_v40  ;;  %v382_v7 = vrot.slane %v1834_v51, %v1815_v43  ;;  %v560_v8 = vrot.slane %v1828_v48, %v1838_v53  ;;  %v496_v27 = vrot.slane %v1834_v51, %v1818_v44 }
 0x10b   : > { %v1854_v61 = vpop.eup %1417  ;;  %v1857_v62 = vmul.f32 %v1850_v59, %v295_v52  ;;  %v367_v63 = vpop.permute.xlu1 %366 }
 0x10c   : > { %v419_v0 = vpop.permute.xlu0 %418  ;;  %v1865_v4 = vmul.f32 %v1854_v61, %v296_v54  ;;  %v457_v6 = vmul.f32 %v436_v60, %v411_v49 }
 0x10d   : > { %v444_v10 = vrot.slane %v1857_v62, %v1810_v40  ;;  %730 = vperm.xlu1 %1408, %v1753_v20   ;;  %v564_v12 = vrot.slane %v1857_v62, %v1838_v53  ;;  %v390_v13 = vrot.slane %v1857_v62, %v1815_v43  ;;  %v744_v14 = vrot.slane %v1857_v62, %v1860_v1 }
 0x10e   : > { %v1882_v15 = vpop.eup %1419  ;;  %v394_v16 = vrot.slane %v1865_v4, %v1815_v43  ;;  %v448_v17 = vrot.slane %v1865_v4, %v1810_v40  ;;  %v504_v28 = vrot.slane %v1857_v62, %v1818_v44  ;;  %v508_v41 = vrot.slane %v1865_v4, %v1818_v44 }
 0x10f   : > { %v1888_v18 = vpop.eup %1421  ;;  %v1891_v19 = vmul.f32 %v1882_v15, %v298_v5  ;;  %v1893_v20 = vmul.f32 %v444_v10, %v419_v0  ;;  %v624_v52 = vrot.slane %v1857_v62, %v1821_v45  ;;  %v680_v5 = vrot.slane %v1828_v48, %v1896_v22 }
 0x110   : > { %v1899_v23 = vmul.f32 %v1888_v18, %v297_v9  ;;  %v406_v24 = vmul.f32 %v394_v16, %v367_v63  ;;  %v423_v25 = vpop.permute.xlu1 %422  ;;  %v352_v26 = vpop.permute.xlu0 %351  ;;  %v568_v63 = vrot.slane %v1865_v4, %v1838_v53  ;;  %v1010_v16 = vld [vmem:[#allocation7 + $0x20] sm:$0xff] }
 0x111   : > { %v460_v30 = vmul.f32 %v448_v17, %v423_v25  ;;  %v403_v31 = vmul.f32 %v382_v7, %v352_v26  ;;  %1410 = vset.pattern.permute.xlu1 %v1549_v29  ;;  %v402_v2 = vrot.slane %v1891_v19, %v1815_v43  ;;  %v576_v32 = vrot.slane %v1891_v19, %v1838_v53  ;;  %v1011_v17 = vld [vmem:[#allocation7 + $0x28] sm:$0xff]  ;;  %v924_v25 = vld [vmem:[#allocation7 + $0x18] sm:$0xff] }
 0x112   : > { %778 = vperm.xlu1 %1410, %v1741_v11   ;;  %v398_v33 = vrot.slane %v1899_v23, %v1815_v43  ;;  %v632_v34 = vrot.slane %v1899_v23, %v1821_v45  ;;  %v452_v35 = vrot.slane %v1899_v23, %v1810_v40  ;;  %v456_v29 = vrot.slane %v1891_v19, %v1810_v40 }
 0x113   : > { %v466_v36 = vadd.f32 %v460_v30, %v406_v24  ;;  %v463_v37 = vadd.f32 %v457_v6, %v403_v31  ;;  %v512_v38 = vrot.slane %v1899_v23, %v1818_v44  ;;  %v516_v11 = vrot.slane %v1891_v19, %v1818_v44 }
 0x114   : > { %v377_v39 = vpop.permute.xlu0 %376  ;;  %v572_v49 = vrot.slane %v1899_v23, %v1838_v53  ;;  %v636_v0 = vrot.slane %v1891_v19, %v1821_v45  ;;  %v684_v7 = vrot.slane %v1857_v62, %v1896_v22  ;;  %v1952_v30 = vpack.c.bf16 %v1011_v17, %v1010_v16 }
 0x115   : > { %v408_v54 = vmul.f32 %v402_v2, %v377_v39  ;;  %v471_v60 = vpop.permute.xlu1 %470  ;;  %v1278_v24 = vpack.c.bf16 %v924_v25, %v923_v3  ;;  %v676_v44 = vrot.slane %v1834_v51, %v1896_v22 }
 0x116   : > { %v517_v6 = vmul.f32 %v496_v27, %v471_v60  ;;  %786 = vperm.xlu1 %1410, %v1755_v21   ;;  %1283 = vmatprep.subr.bf16.mxu0 %v1952_v30 }
 0x117   : > { %1279 = vmatprep.subr.bf16.mxu1 %v1278_v24 }
 0x118   : > { %v523_v27 = vadd.f32 %v517_v6, %v463_v37  ;;  %1281 = vmatpush3.bf16.msra.mxu1 %v1278_v24  ;;  %v556_v24 = vrot.slane %v1834_v51, %v1838_v53 }
 0x119   : > { %v483_v2 = vpop.permute.xlu1 %482  ;;  %v543_v39 = vpop.permute.xlu0 %542 }
 0x11a   : > { %v520_v60 = vmul.f32 %v508_v41, %v483_v2  ;;  %v580_v42 = vmul.f32 %v568_v63, %v543_v39 }
 0x11c   : > { %v526_v10 = vadd.f32 %v520_v60, %v466_v36 }
 0x11d   : > { %v539_v21 = vpop.permute.xlu0 %538 }
 0x11e   : > { %v586_v9 = vadd.f32 %v580_v42, %v526_v10  ;;  %v579_v37 = vmul.f32 %v564_v12, %v539_v21  ;;  %v357_v6 = vpop.permute.xlu1 %356  ;;  %v628_v10 = vrot.slane %v1865_v4, %v1821_v45 }
 0x11f   : > { %v404_v41 = vmul.f32 %v386_v55, %v357_v6  ;;  %v616_v55 = vrot.slane %v1834_v51, %v1821_v45 }
 0x121   : > { %v551_v63 = vpop.permute.xlu0 %550 }
 0x122   : > { %v362_v16 = vpop.permute.xlu1 %361 }
 0x123   : > { %v405_v3 = vmul.f32 %v390_v13, %v362_v16 }
 0x125   : > { %v465_v36 = vadd.f32 %v1893_v20, %v405_v3 }
 0x126   : > { %v591_v17 = vpop.permute.xlu0 %590 }
 0x127   : > { %v415_v42 = vpop.permute.xlu1 %414  ;;  %v637_v20 = vmul.f32 %v616_v55, %v591_v17 }
 0x128   : > { %v458_v12 = vmul.f32 %v440_v56, %v415_v42 }
 0x12a   : > { %v464_v25 = vadd.f32 %v458_v12, %v404_v41  ;;  %v603_v21 = vpop.permute.xlu0 %602 }
 0x12b   : > { %v640_v13 = vmul.f32 %v628_v10, %v603_v21 }
 0x12c   : > { %v531_v2 = vpop.permute.xlu1 %530 }
 0x12d   : > { %v646_v39 = vadd.f32 %v640_v13, %v586_v9  ;;  %v577_v60 = vmul.f32 %v556_v24, %v531_v2 }
 0x12e   : > { %v595_v55 = vpop.permute.xlu0 %594 }
 0x12f   : > { %v583_v6 = vadd.f32 %v577_v60, %v523_v27 }
 0x131   : > { %v372_v16 = vpop.permute.xlu1 %371  ;;  %v643_v3 = vadd.f32 %v637_v20, %v583_v6 }
 0x132   : > { %v407_v56 = vmul.f32 %v398_v33, %v372_v16  ;;  %v607_v24 = vpop.permute.xlu0 %606 }
 0x133   : > { %v641_v16 = vmul.f32 %v632_v34, %v607_v24 }
 0x136   : > { %v427_v42 = vpop.permute.xlu1 %426 }
 0x137   : > { %v461_v31 = vmul.f32 %v452_v35, %v427_v42  ;;  %v723_v2 = vpop.permute.xlu0 %722  ;;  %v748_v42 = vrot.slane %v1865_v4, %v1860_v1 }
 0x139   : > { %v467_v26 = vadd.f32 %v461_v31, %v407_v56 }
 0x13a   : > { %v431_v41 = vpop.permute.xlu1 %430 }
 0x13b   : > { %v462_v17 = vmul.f32 %v456_v29, %v431_v41  ;;  %v688_v41 = vrot.slane %v1865_v4, %v1896_v22 }
 0x13d   : > { %v468_v9 = vadd.f32 %v462_v17, %v408_v54 }
 0x13f   : > { %v475_v10 = vpop.permute.xlu1 %474 }
 0x140   : > { %v518_v27 = vmul.f32 %v500_v58, %v475_v10 }
 0x142   : > { %v524_v12 = vadd.f32 %v518_v27, %v464_v25  ;;  %v582_v25 = vmul.f32 %v576_v32, %v551_v63  ;;  %v719_v32 = vpop.permute.xlu0 %718  ;;  %v760_v27 = vmul.f32 %v748_v42, %v723_v2 }
 0x143   : > { %v479_v43 = vpop.permute.xlu1 %478 }
 0x144   : > { %v519_v33 = vmul.f32 %v504_v28, %v479_v43 }
 0x146   : > { %v525_v35 = vadd.f32 %v519_v33, %v465_v36  ;;  %v771_v56 = vpop.permute.xlu0 %770 }
 0x147   : > { %v487_v31 = vpop.permute.xlu1 %486 }
 0x148   : > { %v521_v40 = vmul.f32 %v512_v38, %v487_v31  ;;  %v585_v29 = vadd.f32 %v579_v37, %v525_v35  ;;  %v796_v31 = vrot.slane %v1834_v51, %v1831_v50 }
 0x14a   : > { %v527_v54 = vadd.f32 %v521_v40, %v467_v26  ;;  %v638_v26 = vmul.f32 %v620_v57, %v595_v55  ;;  %v736_v40 = vrot.slane %v1834_v51, %v1860_v1  ;;  %v817_v24 = vmul.f32 %v796_v31, %v771_v56 }
 0x14b   : > { %v491_v21 = vpop.permute.xlu1 %490  ;;  %v2160_v56 = vrot.slane %v1899_v23, %v1860_v1 }
 0x14c   : > { %v522_v58 = vmul.f32 %v516_v11, %v491_v21 }
 0x14e   : > { %v528_v28 = vadd.f32 %v522_v58, %v468_v9 }
 0x150   : > { %v535_v13 = vpop.permute.xlu1 %534  ;;  %v588_v36 = vadd.f32 %v582_v25, %v528_v28 }
 0x151   : > { %v578_v38 = vmul.f32 %v560_v8, %v535_v13 }
 0x153   : > { %v584_v37 = vadd.f32 %v578_v38, %v524_v12  ;;  %v783_v12 = vpop.permute.xlu0 %782  ;;  %v2156_v38 = vrot.slane %v1899_v23, %v1896_v22 }
 0x155   : > { %v651_v11 = vpop.permute.xlu1 %650  ;;  %v644_v20 = vadd.f32 %v638_v26, %v584_v37 }
 0x156   : > { %v697_v60 = vmul.f32 %v676_v44, %v651_v11 }
 0x158   : > { %v703_v63 = vadd.f32 %v697_v60, %v643_v3  ;;  %v808_v3 = vrot.slane %v1865_v4, %v1831_v50  ;;  %v775_v60 = vpop.permute.xlu0 %774 }
 0x15a   : > { %v547_v6 = vpop.permute.xlu1 %546  ;;  %v820_v43 = vmul.f32 %v808_v3, %v783_v12  ;;  %v2161_v3 = vrot.slane %v1891_v19, %v1860_v1 }
 0x15b   : > { %v581_v8 = vmul.f32 %v572_v49, %v547_v6 }
 0x15d   : > { %v587_v57 = vadd.f32 %v581_v8, %v527_v54 }
 0x15f   : > { %v663_v17 = vpop.permute.xlu1 %662  ;;  %v647_v9 = vadd.f32 %v641_v16, %v587_v57 }
 0x160   : > { %v700_v10 = vmul.f32 %v688_v41, %v663_v17  ;;  %v791_v17 = vpop.permute.xlu0 %790 }
 0x162   : > { %v706_v34 = vadd.f32 %v700_v10, %v646_v39 }
 0x164   : > { %v766_v53 = vadd.f32 %v760_v27, %v706_v34  ;;  %v599_v49 = vpop.permute.xlu1 %598 }
 0x165   : > { %v639_v33 = vmul.f32 %v624_v52, %v599_v49 }
 0x166   : > { %v826_v55 = vadd.f32 %v820_v43, %v766_v53  ;;  %v2163_v53 = vrot.slane %v1857_v62, %v1831_v50 }
 0x167   : > { %v645_v35 = vadd.f32 %v639_v33, %v585_v29 }
 0x168   : > { %v832_v28 = vmul.f32 %v1854_v61, %v826_v55  ;;  %v759_v61 = vmul.f32 %v744_v14, %v719_v32  ;;  %v2159_v32 = vrot.slane %v1828_v48, %v1831_v50 }
 0x169   : > { %v711_v4 = vpop.permute.xlu1 %710 }
 0x16a   : > { %v757_v54 = vmul.f32 %v736_v40, %v711_v4  ;;  %v818_v6 = vmul.f32 %v2159_v32, %v775_v60 }
 0x16c   : > { %v763_v39 = vadd.f32 %v757_v54, %v703_v63  ;;  %v2158_v63 = vrot.slane %v1828_v48, %v1860_v1  ;;  %v2162_v48 = vrot.slane %v1891_v19, %v1831_v50 }
 0x16e   : > { %v611_v21 = vpop.permute.xlu1 %610  ;;  %v823_v58 = vadd.f32 %v817_v24, %v763_v39  ;;  %v822_v27 = vmul.f32 %v2162_v48, %v791_v17 }
 0x16f   : > { %v642_v25 = vmul.f32 %v636_v0, %v611_v21 }
 0x170   : > { %v829_v52 = vmul.f32 %v1825_v47, %v823_v58 }
 0x171   : > { %v648_v29 = vadd.f32 %v642_v25, %v588_v36 }
 0x172   : > { %1257 = vmatprep.mubr.msk.f32.mxu0 %vm837_vm2, %v829_v52 }
 0x173   : > { %v655_v13 = vpop.permute.xlu1 %654  ;;  %1258 = vmatmul.mubr.msk.f32.vlgmr.msra.gmra.mrb[0].mxu0 %vm837_vm2, %v832_v28 }
 0x174   : > { %v698_v51 = vmul.f32 %v680_v5, %v655_v13  ;;  %1285 = vmatpush3.bf16.msra.mxu0 %v1952_v30  ;;  %v2157_v30 = vrot.slane %v1891_v19, %v1896_v22 }
 0x176   : > { %v704_v2 = vadd.f32 %v698_v51, %v644_v20 }
 0x177   : > { %v659_v45 = vpop.permute.xlu1 %658 }
 0x178   : > { %v699_v47 = vmul.f32 %v684_v7, %v659_v45 }
 0x17a   : > { %v705_v0 = vadd.f32 %v699_v47, %v645_v35  ;;  %v2164_v35 = vrot.slane %v1899_v23, %v1831_v50 }
 0x17b   : > { %v667_v36 = vpop.permute.xlu1 %666 }
 0x17c   : > { %v701_v26 = vmul.f32 %v2156_v38, %v667_v36  ;;  %v765_v37 = vadd.f32 %v759_v61, %v705_v0 }
 0x17e   : > { %v707_v5 = vadd.f32 %v701_v26, %v647_v9 }
 0x17f   : > { %v671_v44 = vpop.permute.xlu1 %670 }
 0x180   : > { %v702_v11 = vmul.f32 %v2157_v30, %v671_v44 }
 0x182   : > { %v708_v20 = vadd.f32 %v702_v11, %v648_v29 }
 0x184   : > { %v715_v7 = vpop.permute.xlu1 %714 }
 0x185   : > { %v758_v14 = vmul.f32 %v2158_v63, %v715_v7 }
 0x187   : > { %v764_v16 = vadd.f32 %v758_v14, %v704_v2 }
 0x188   : > { %v727_v8 = vpop.permute.xlu1 %726 }
 0x189   : > { %v761_v57 = vmul.f32 %v2160_v56, %v727_v8  ;;  %v824_v42 = vadd.f32 %v818_v6, %v764_v16 }
 0x18b   : > { %v767_v22 = vadd.f32 %v761_v57, %v707_v5  ;;  %v830_v41 = vmul.f32 %v1823_v46, %v824_v42 }
 0x18c   : > { %v731_v9 = vpop.permute.xlu1 %730 }
 0x18d   : > { %v762_v10 = vmul.f32 %v2161_v3, %v731_v9  ;;  %1264 = vmatprep.mubr.msk.f32.mxu1 %vm837_vm2, %v830_v41 }
 0x18f   : > { %v768_v34 = vadd.f32 %v762_v10, %v708_v20 }
 0x191   : > { %v828_v12 = vadd.f32 %v822_v27, %v768_v34  ;;  %v779_v43 = vpop.permute.xlu1 %778 }
 0x192   : > { %v819_v46 = vmul.f32 %v2163_v53, %v779_v43 }
 0x193   : > { %v834_v49 = vmul.f32 %v1882_v15, %v828_v12 }
 0x194   : > { %v825_v33 = vadd.f32 %v819_v46, %v765_v37 }
 0x195   : > { %v787_v1 = vpop.permute.xlu1 %786 }
 0x196   : > { %v831_v55 = vmul.f32 %v1850_v59, %v825_v33  ;;  %v821_v19 = vmul.f32 %v2164_v35, %v787_v1 }
 0x198   : > { %v827_v31 = vadd.f32 %v821_v19, %v767_v22  ;;  %1271 = vmatprep.mubr.msk.f32.mxu0 %vm837_vm2, %v831_v55 }
 0x199   : > { %1272 = vmatmul.mubr.msk.f32.vlgmr.msra.gmra.mrb[2].mxu0 %vm837_vm2, %v834_v49 }
 0x19a   : > { %v833_v40 = vmul.f32 %v1888_v18, %v827_v31 }
 0x19c   : > { %1265 = vmatmul.mubr.msk.f32.vlgmr.msra.gmra.mrb[0].mxu1 %vm837_vm2, %v833_v40 }
 0x246   : > { %v1259_v62 = vpop.f32.mrb[0].mxu0 }
 0x247   : > { %921 = vst.msk [vmem:[%s292_s23 + $0x8] sm:$0xff] %vm919_vm3, %v1259_v62  ;;  %v910_v59 = vpop.f32.mrb[1].mxu0 }
 0x248   : > { %920 = vst.msk [vmem:[%s292_s23] sm:$0xff] %vm919_vm3, %v910_v59 }
 0x26c   : > { %v1273_v50 = vpop.f32.mrb[2].mxu0 }
 0x26d   : > { %1237 = vst.msk [vmem:[%s292_s23 + $0x28] sm:$0xff] %vm919_vm3, %v1273_v50  ;;  %v1084_v15 = vpop.f32.mrb[3].mxu0 }
 0x26e   : > { %1236 = vst.msk [vmem:[%s292_s23 + $0x20] sm:$0xff] %vm919_vm3, %v1084_v15 }
 0x26f   : > { %v1266_v18 = vpop.f32.mrb[0].mxu1 }
 0x270   : > { %1233 = vst.msk [vmem:[%s292_s23 + $0x18] sm:$0xff] %vm919_vm3, %v1266_v18  ;;  %v997_v23 = vpop.f32.mrb[1].mxu1 }
 0x271   : > { %1232 = vst.msk [vmem:[%s292_s23 + $0x10] sm:$0xff] %vm919_vm3, %v997_v23 }
 0x272   : > { %1464 = shalt.err (!%p1461_p1)
}
 0x273   : > { %s1465_s17 = scalar_lea.hbm %s2090_s5, 768  ;;  %s1469_s7 = scalar_lea.hbm %s2139_s3, 1536 }
 0x274   : > { %p1466_p4 = scmp.ne.s32.totalorder %s2090_s5, %s1465_s17  ;;  %p1470_p11 = scmp.lt.u32.totalorder %s2090_s5, %s2139_s3 }
 0x275   : > { %p1471_p12 = scmp.lt.u32.totalorder %s1469_s7, %s1465_s17  ;;  %p1473_p3 = scmp.lt.u32.totalorder %s1465_s17, %s2090_s5 }
 0x276   : > { %p1467_p5 = pnand %p1466_p4, %p2165_p2 }
 0x277   : > { %p1472_p13 = por %p1471_p12, %p1470_p11 }
 0x278   : > { %p1468_p6 = pneg %p1467_p5 }
 0x279   : > { %p1474_p7 = por %p1473_p3, %p1472_p13 }
 0x27b   : > { %p1475_p8 = pnand %p1474_p7, %p1468_p6 }
 0x27d   : > { %1478 = shalt.err (!%p1475_p8)
}
 0x27e   : > { %s1552_s9 = smov 128   ;;  %s1553_s23 = smov 8  }
 0x27f   : > { %1314 = dma.vmem_to_hbm [thread:$0]  (%p2165_p2), %s2083_s19, 768, %s2090_s5, %s1097_s16, %s1552_s9, %s1552_s9, %s1553_s23  }
 0x280 PF: > { %s1125_s27 = sand.u32 1, %s1513_s12   ;;  %p2166_p9 = scmp.ne.s32.totalorder %s2148_s25, 0 }
 0x281   : > { %s1126_s10 = scalar_lea.sflag [#allocation4], %s1125_s27 }
 0x282   : > { %p1321_p10 = pnand %p1218_p0, %p2166_p9 }
 0x284   : > { %1508 = dma.done.wait (!%p1321_p10), %s1126_s10, 768  }
 0x285   : > { %1510 = vsyncadd (!%p1321_p10), %s1126_s10, 4294966528  ;;  %p19_p1 = scmp.ge.s32.totalorder %s1599_s18, 4   ;;  %s2167_s12 = smov %s1517_s13 }
 0x286   : > { %s2168_s13 = smov %s1521_s14  ;;  %s2169_s14 = smov %s1611_s21 }
 0x287   : > { %s2170_s15 = smov %s1599_s18  ;;  %21 = sbr.rel (!%p19_p1) target bundleno = 7 (0x7), region = 108 }
 0x28e   :  { %1131 = vsyncpa [#allocation3], 1 }
 0x28f   :  { %1133 = vsyncpa [#allocation3 + $0x1], 1 }
 0x290   :  { %1134 = vsyncpa [#allocation6], 1 }
 0x291   :  { %1136 = vsyncpa [#allocation6 + $0x1], 1 }
 0x292   :  { %1137 = vsyncpa [#allocation4], 1 }
 0x293   :  { %1139 = vsyncpa [#allocation4 + $0x1], 1 }

</bundles_post_ra>
